<compile_context>
chip_gen: v7x
topology: tpu7x:2x2x1
jax: 0.10.0
libtpu: 0.0.40
codegen_flags: <defaults>
</compile_context>

<pallas_src>
import functools

import jax
import jax.numpy as jnp
from jax import lax
from jax.experimental import pallas as pl
from jax.experimental.pallas import tpu as pltpu


_LANES = 128
_MAX_BLOCK_ROWS = 2048   # 2048 * 128 * 4 B = 1 MiB per f32 input block
_CHUNK_ROWS = 128        # strip-mine unit inside a block (64 KiB f32 per value)


def _cdiv(a, b):
    return -(-a // b)


def _chunk_partials(x, t, valid, accs, *, gamma, binary_target):
    """Accumulate partial sums for one (crows, 128) chunk.

    accs is a 4-tuple of (1, 128) f32 rows:
      focal elementwise term, sigmoid*target, sigmoid, target.
    `valid` is a bool mask of x.shape, or None (no masking needed).
    """
    # softplus(x) = max(x, 0) + log(1 + exp(-|x|))   (stable; 2 EUP ops)
    sp_x = jnp.maximum(x, 0.0) + jnp.log(1.0 + jnp.exp(-jnp.abs(x)))
    # torch's stable BCE-with-logits == softplus(x) - x*t
    bce = sp_x - x * t
    # sigmoid(x) = exp(x - softplus(x))  (reuses sp_x; 1 EUP op, no divide)
    sig = jnp.exp(x - sp_x)

    g = float(gamma)
    if binary_target and g == int(g) and 0 <= int(g) <= 8:
        # For t in {0,1}: exp(gamma*logsigmoid(-x*(2t-1))) == |t - sigmoid(x)|**gamma
        p = t + sig - 2.0 * t * sig
        ig = int(g)
        if ig == 0:
            factor = jnp.ones_like(p)
        else:
            factor = p
            for _ in range(ig - 1):
                factor = factor * p
    elif binary_target:
        # For t in {0,1}: softplus(x*(2t-1)) == softplus(x) - x*(1-t)
        factor = jnp.exp(-gamma * (sp_x - x * (1.0 - t)))
    else:
        # General (possibly soft) labels: invprobs = -softplus(x*(2t-1))
        z = x * (t * 2.0 - 1.0)
        sp_z = jnp.maximum(z, 0.0) + jnp.log(1.0 + jnp.exp(-jnp.abs(z)))
        factor = jnp.exp(-gamma * sp_z)

    focal_elem = factor * bce

    if valid is not None:
        # Ragged/padded regions hold unspecified data; select (not multiply)
        # so garbage / NaN never leaks into the sums.
        focal_elem = jnp.where(valid, focal_elem, 0.0)
        sig = jnp.where(valid, sig, 0.0)
        t = jnp.where(valid, t, 0.0)

    def rsum(v):  # (crows, 128) -> (1, 128)
        return jnp.sum(v, axis=0, keepdims=True)

    a_focal, a_inter, a_sig, a_t = accs
    return (a_focal + rsum(focal_elem),
            a_inter + rsum(sig * t),
            a_sig + rsum(sig),
            a_t + rsum(t))


def _mixed_partials_kernel(x_ref, t_ref, out_ref, *, gamma, n, block_rows,
                           binary_target, tail_mode):
    """Writes a (1, 8, 128) block of partial sums (rows 0..3 used, 4..7 zero)."""
    i = pl.program_id(0)
    num_full = block_rows // _CHUNK_ROWS
    rem = block_rows - num_full * _CHUNK_ROWS

    def run_block(masked):
        base = i * (block_rows * _LANES)   # global element index of block start
        zrow = jnp.zeros((1, _LANES), jnp.float32)
        accs = (zrow, zrow, zrow, zrow)

        def do_chunk(r0, crows, accs):
            x = x_ref[pl.ds(r0, crows), :].astype(jnp.float32)
            t = t_ref[pl.ds(r0, crows), :].astype(jnp.float32)
            if masked:
                rid = lax.broadcasted_iota(jnp.int32, (crows, _LANES), 0)
                lid = lax.broadcasted_iota(jnp.int32, (crows, _LANES), 1)
                valid = (base + (r0 + rid) * _LANES + lid) < n
            else:
                valid = None
            return _chunk_partials(x, t, valid, accs,
                                   gamma=gamma, binary_target=binary_target)

        if num_full > 0:
            def body(c, accs):
                r0 = pl.multiple_of(c * _CHUNK_ROWS, _CHUNK_ROWS)
                return do_chunk(r0, _CHUNK_ROWS, accs)
            accs = lax.fori_loop(0, num_full, body, accs, unroll=True)
        if rem > 0:
            accs = do_chunk(num_full * _CHUNK_ROWS, rem, accs)

        f, inter, s, tt = accs
        out_ref[0] = jnp.concatenate(
            [f, inter, s, tt, jnp.zeros((4, _LANES), jnp.float32)], axis=0)

    if tail_mode == "none":
        run_block(masked=False)
    elif tail_mode == "all":          # single block that needs masking
        run_block(masked=True)
    else:                              # "last": only the final block is ragged/padded
        last = pl.num_programs(0) - 1

        @pl.when(i < last)
        def _():
            run_block(masked=False)

        @pl.when(i == last)
        def _():
            run_block(masked=True)


@functools.partial(jax.jit, static_argnames=("alpha", "gamma", "binary_target"))
def mixed_loss(inp, target, *, alpha=0.75, gamma=2.0, binary_target=False):
    """Pallas TPU implementation of MixedLoss.forward."""
    n = int(inp.size)
    x = inp.reshape(-1)
    t = target.reshape(-1)

    rows = _cdiv(max(n, 1), _LANES)
    pad = rows * _LANES - n
    if pad:
        # TODO(synk): this rare (n % 128 != 0) case costs one full-tensor copy;
        # a plain-JAX <128-element tail epilogue would avoid it if it matters.
        x = jnp.pad(x, (0, pad))
        t = jnp.pad(t, (0, pad))

    block_rows = min(_MAX_BLOCK_ROWS, rows)
    num_blocks = _cdiv(rows, block_rows)

    has_pad = pad != 0
    ragged = (rows % block_rows) != 0
    if not (has_pad or ragged):
        tail_mode = "none"
    elif num_blocks == 1:
        tail_mode = "all"
    else:
        tail_mode = "last"

    x2 = x.reshape(rows, _LANES)
    t2 = t.reshape(rows, _LANES)

    in_block = pl.BlockSpec((block_rows, _LANES), lambda i: (i, 0))
    out_block = pl.BlockSpec((1, 8, _LANES), lambda i: (i, 0, 0))

    partials = pl.pallas_call(
        functools.partial(
            _mixed_partials_kernel,
            gamma=float(gamma), n=n, block_rows=block_rows,
            binary_target=bool(binary_target), tail_mode=tail_mode),
        out_shape=jax.ShapeDtypeStruct((num_blocks, 8, _LANES), jnp.float32),
        grid=(num_blocks,),
        in_specs=[in_block, in_block],
        out_specs=out_block,
        compiler_params=pltpu.CompilerParams(
            dimension_semantics=("parallel",),
            vmem_limit_bytes=32 * 1024 * 1024),
    )(x2, t2)

    # Cross-lane / cross-block reduction + tiny scalar epilogue in plain JAX.
    sums = partials[:, :4, :].sum(axis=(0, 2))
    focal = sums[0] / jnp.float32(n)               # FocalLoss3: loss.mean()
    smooth = jnp.float32(1.0)
    dice = 1.0 - (2.0 * sums[1] + smooth) / (sums[2] + sums[3] + smooth)

    # MixedLoss.forward: final .mean() on a scalar is the identity.
    return alpha * focal + (1.0 - alpha) * dice


def _mixed_loss_ref(inp, target, alpha=0.75, gamma=2.0):
    """Pure-JAX reference mirroring the PyTorch module, for verification."""
    x = inp.astype(jnp.float32)
    t = target.astype(jnp.float32)
    max_val = jnp.clip(-x, 0.0, None)
    bce = x - x * t + max_val + jnp.log(jnp.exp(-max_val) + jnp.exp(-x - max_val))
    invprobs = jax.nn.log_sigmoid(-x * (t * 2.0 - 1.0))
    focal = jnp.mean(jnp.exp(invprobs * gamma) * bce)
    sig = jax.nn.sigmoid(x).reshape(-1)
    tf = t.reshape(-1)
    inter = jnp.sum(sig * tf)
    dice = 1.0 - (2.0 * inter + 1.0) / (jnp.sum(sig) + jnp.sum(tf) + 1.0)
    return alpha * focal + (1.0 - alpha) * dice


if __name__ == "__main__":
    key = jax.random.PRNGKey(0)
    k1, k2, k3, k4, k5, k6 = jax.random.split(key, 6)

    # Primary case: NCHW logits + binary target, no padding needed (n % 128 == 0).
    x = jax.random.normal(k1, (2, 4, 16, 16), dtype=jnp.float32)
    t = (jax.random.uniform(k2, (2, 4, 16, 16)) > 0.5).astype(jnp.float32)
    out = jax.block_until_ready(mixed_loss(x, t, alpha=0.75, gamma=2.0))
    ref = _mixed_loss_ref(x, t, alpha=0.75, gamma=2.0)
    assert jnp.allclose(out, ref, rtol=2e-5, atol=2e-5), (out, ref)

    # Binary-target fast path (reduced transcendental count).
    out_b = jax.block_until_ready(
        mixed_loss(x, t, alpha=0.75, gamma=2.0, binary_target=True))
    assert jnp.allclose(out_b, ref, rtol=2e-5, atol=2e-5), (out_b, ref)

    # Non-128-multiple element count: exercises the masked (padded) tail path.
    x2 = jax.random.normal(k3, (3, 1, 33, 37), dtype=jnp.float32)
    t2 = (jax.random.uniform(k4, (3, 1, 33, 37)) > 0.5).astype(jnp.float32)
    out2 = jax.block_until_ready(mixed_loss(x2, t2, alpha=0.75, gamma=2.0))
    ref2 = _mixed_loss_ref(x2, t2, alpha=0.75, gamma=2.0)
    assert jnp.allclose(out2, ref2, rtol=2e-5, atol=2e-5), (out2, ref2)

    # Multi-block case with a ragged last block: exercises fori_loop chunks +
    # the pl.when-gated mask path.
    x3 = jax.random.normal(k5, (2, 4, 192, 192), dtype=jnp.float32)
    t3 = (jax.random.uniform(k6, (2, 4, 192, 192)) > 0.5).astype(jnp.float32)
    out3 = jax.block_until_ready(mixed_loss(x3, t3, alpha=0.75, gamma=2.0))
    ref3 = _mixed_loss_ref(x3, t3, alpha=0.75, gamma=2.0)
    assert jnp.allclose(out3, ref3, rtol=2e-5, atol=2e-5), (out3, ref3)

    print("KERNEL_OK")
</pallas_src>

<mosaic_0001>
module attributes {stable_mosaic.version = 11 : i64} {
  func.func @_mixed_partials_kernel(%arg0: i32, %arg1: memref<16x128xf32, #tpu.memory_space<vmem>>, %arg2: memref<16x128xf32, #tpu.memory_space<vmem>>, %arg3: memref<1x8x128xf32, #tpu.memory_space<vmem>>) attributes {dimension_semantics = [#tpu.dimension_semantics<parallel>], iteration_bounds = array<i64: 1>, scalar_prefetch = 0 : i64, scratch_operands = 0 : i64, tpu.core_type = #tpu.core_type<tc>, window_params = [{transform_indices = @transform_0, window_bounds = array<i64: 16, 128>}, {transform_indices = @transform_1, window_bounds = array<i64: 16, 128>}, {transform_indices = @transform_2, window_bounds = array<i64: 1, 8, 128>}]} {
    %cst = arith.constant 0.000000e+00 : f32
    %0 = vector.broadcast %cst : f32 to vector<1x128xf32>
    %c0 = arith.constant 0 : index
    %c0_0 = arith.constant 0 : index
    %1 = vector.load %arg1[%c0, %c0_0] : memref<16x128xf32, #tpu.memory_space<vmem>>, vector<16x128xf32>
    %c0_1 = arith.constant 0 : index
    %c0_2 = arith.constant 0 : index
    %2 = vector.load %arg2[%c0_1, %c0_2] : memref<16x128xf32, #tpu.memory_space<vmem>>, vector<16x128xf32>
    %cst_3 = arith.constant 0.000000e+00 : f32
    %3 = vector.broadcast %cst_3 : f32 to vector<16x128xf32>
    %4 = arith.maximumf %1, %3 : vector<16x128xf32>
    %5 = math.absf %1 : vector<16x128xf32>
    %cst_4 = arith.constant 0.000000e+00 : f32
    %6 = vector.broadcast %cst_4 : f32 to vector<16x128xf32>
    %7 = arith.subf %6, %5 : vector<16x128xf32>
    %8 = math.exp %7 : vector<16x128xf32>
    %cst_5 = arith.constant 1.000000e+00 : f32
    %9 = vector.broadcast %cst_5 : f32 to vector<16x128xf32>
    %10 = arith.addf %9, %8 : vector<16x128xf32>
    %11 = math.log %10 : vector<16x128xf32>
    %12 = arith.addf %4, %11 : vector<16x128xf32>
    %13 = arith.mulf %1, %2 : vector<16x128xf32>
    %14 = arith.subf %12, %13 : vector<16x128xf32>
    %15 = arith.subf %1, %12 : vector<16x128xf32>
    %16 = math.exp %15 : vector<16x128xf32>
    %cst_6 = arith.constant 2.000000e+00 : f32
    %17 = vector.broadcast %cst_6 : f32 to vector<16x128xf32>
    %18 = arith.mulf %2, %17 : vector<16x128xf32>
    %cst_7 = arith.constant 1.000000e+00 : f32
    %19 = vector.broadcast %cst_7 : f32 to vector<16x128xf32>
    %20 = arith.subf %18, %19 : vector<16x128xf32>
    %21 = arith.mulf %1, %20 : vector<16x128xf32>
    %cst_8 = arith.constant 0.000000e+00 : f32
    %22 = vector.broadcast %cst_8 : f32 to vector<16x128xf32>
    %23 = arith.maximumf %21, %22 : vector<16x128xf32>
    %24 = math.absf %21 : vector<16x128xf32>
    %cst_9 = arith.constant 0.000000e+00 : f32
    %25 = vector.broadcast %cst_9 : f32 to vector<16x128xf32>
    %26 = arith.subf %25, %24 : vector<16x128xf32>
    %27 = math.exp %26 : vector<16x128xf32>
    %cst_10 = arith.constant 1.000000e+00 : f32
    %28 = vector.broadcast %cst_10 : f32 to vector<16x128xf32>
    %29 = arith.addf %28, %27 : vector<16x128xf32>
    %30 = math.log %29 : vector<16x128xf32>
    %31 = arith.addf %23, %30 : vector<16x128xf32>
    %cst_11 = arith.constant -2.000000e+00 : f32
    %32 = vector.broadcast %cst_11 : f32 to vector<16x128xf32>
    %33 = arith.mulf %32, %31 : vector<16x128xf32>
    %34 = math.exp %33 : vector<16x128xf32>
    %35 = arith.mulf %34, %14 : vector<16x128xf32>
    %cst_12 = arith.constant dense<0.000000e+00> : vector<128xf32>
    %36 = vector.multi_reduction <add>, %35, %cst_12 [0] : vector<16x128xf32> to vector<128xf32>
    %37 = vector.shape_cast %36 : vector<128xf32> to vector<1x128xf32>
    %38 = arith.addf %0, %37 : vector<1x128xf32>
    %39 = arith.mulf %16, %2 : vector<16x128xf32>
    %cst_13 = arith.constant dense<0.000000e+00> : vector<128xf32>
    %40 = vector.multi_reduction <add>, %39, %cst_13 [0] : vector<16x128xf32> to vector<128xf32>
    %41 = vector.shape_cast %40 : vector<128xf32> to vector<1x128xf32>
    %42 = arith.addf %0, %41 : vector<1x128xf32>
    %cst_14 = arith.constant dense<0.000000e+00> : vector<128xf32>
    %43 = vector.multi_reduction <add>, %16, %cst_14 [0] : vector<16x128xf32> to vector<128xf32>
    %44 = vector.shape_cast %43 : vector<128xf32> to vector<1x128xf32>
    %45 = arith.addf %0, %44 : vector<1x128xf32>
    %cst_15 = arith.constant dense<0.000000e+00> : vector<128xf32>
    %46 = vector.multi_reduction <add>, %2, %cst_15 [0] : vector<16x128xf32> to vector<128xf32>
    %47 = vector.shape_cast %46 : vector<128xf32> to vector<1x128xf32>
    %48 = arith.addf %0, %47 : vector<1x128xf32>
    %cst_16 = arith.constant 0.000000e+00 : f32
    %49 = vector.broadcast %cst_16 : f32 to vector<4x128xf32>
    %50 = tpu.concatenate %38, %42, %45, %48, %49 in 0 : vector<1x128xf32>, vector<1x128xf32>, vector<1x128xf32>, vector<1x128xf32>, vector<4x128xf32> -> vector<8x128xf32>
    %c0_17 = arith.constant 0 : index
    %c0_18 = arith.constant 0 : index
    %c0_19 = arith.constant 0 : index
    %51 = vector.load %arg3[%c0_17, %c0_18, %c0_19] : memref<1x8x128xf32, #tpu.memory_space<vmem>>, vector<1x8x128xf32>
    %52 = vector.shape_cast %51 : vector<1x8x128xf32> to vector<8x128xf32>
    %53 = vector.shape_cast %50 : vector<8x128xf32> to vector<1x8x128xf32>
    tpu.vector_store %arg3[%c0_17, %c0_18, %c0_19], %53 {strides = array<i32>} : memref<1x8x128xf32, #tpu.memory_space<vmem>>, vector<1x8x128xf32>,
    return
  }
  func.func @transform_0(%arg0: i32) -> (i32, i32) {
    %c0_i32 = arith.constant 0 : i32
    %c0_i32_0 = arith.constant 0 : i32
    return %arg0, %c0_i32 : i32, i32
  }
  func.func @transform_1(%arg0: i32) -> (i32, i32) {
    %c0_i32 = arith.constant 0 : i32
    %c0_i32_0 = arith.constant 0 : i32
    return %arg0, %c0_i32 : i32, i32
  }
  func.func @transform_2(%arg0: i32) -> (i32, i32, i32) {
    %c0_i32 = arith.constant 0 : i32
    %c0_i32_0 = arith.constant 0 : i32
    %c0_i32_1 = arith.constant 0 : i32
    return %arg0, %c0_i32, %c0_i32_0 : i32, i32, i32
  }
}

</mosaic_0001>

<bundles_post_ra>
// kernel: mixed_loss.1
= control target key start
LH: loop header
LB: loop body
LE: loop exit
PB: predicated region body
PF: predicated region fallthrough
CT: control target
= control target key end

     0   :  { %vm109_vm0 = vcmask 1040384   ;;  %vm111_vm1 = vcmask 1041408   ;;  %vm113_vm2 = vcmask 1042432   ;;  %vm115_vm3 = vcmask 1043456   ;;  %s204_s0 = inlined_call_operand.vmem [shape: f32[16,128], index: 0, kind: input, shape index: {}]   ;;  %s205_s1 = inlined_call_operand.vmem [shape: f32[16,128], index: 1, kind: input, shape index: {}]   ;;  %s206_s2 = inlined_call_operand.vmem [shape: f32[1,8,128], index: 2, kind: output, shape index: {}]  }
   0x1   :  { %v166_v0 = vld [vmem:[%s204_s0] sm:$0xff]  ;;  %v176_v2 = vld [vmem:[%s204_s0 + $0x8] sm:$0xff] }
   0x2   :  { %v171_v1 = vld [vmem:[%s205_s1] sm:$0xff]  ;;  %v181_v3 = vld [vmem:[%s205_s1 + $0x8] sm:$0xff]  ;;  %v17_v4 = vand.u32 2147483647, %v166_v0  ;;  %v18_v5 = vand.u32 2147483647, %v176_v2 }
   0x3   :  { %v43_v6 = vmul.f32 2.0, %v171_v1  ;;  %v44_v7 = vmul.f32 2.0, %v181_v3  ;;  %v15_v30 = vmax.f32 %v166_v0, 0.0  ;;  %v16_v32 = vmax.f32 %v176_v2, 0.0 }
   0x4   :  { %v19_v8 = vsub.f32 0.0, %v17_v4  ;;  %v20_v9 = vsub.f32 0.0, %v18_v5  ;;  %v101_v54 = vadd.f32 %v181_v3, %v171_v1  ;;  %v33_v56 = vmul.f32 %v171_v1, %v166_v0 }
   0x5   :  { %v122_v10 = vadd.f32 -1.0, %v43_v6  ;;  %v123_v11 = vadd.f32 -1.0, %v44_v7  ;;  %v34_v58 = vmul.f32 %v181_v3, %v176_v2 }
   0x6   :  { %v21_v12 = vmul.f32 1.442695, %v19_v8  ;;  %v23_v13 = vmul.f32 1.442695, %v20_v9  ;;  %v102_v62 = vrot.slane %v101_v54, 4 }
   0x7   :  { %v47_v14 = vmul.f32 %v122_v10, %v166_v0  ;;  %v48_v15 = vmul.f32 %v123_v11, %v176_v2 }
   0x8   :  { %124 = vpow2.f32 %v21_v12  ;;  %v103_v10 = vadd.f32 %v102_v62, %v101_v54 }
   0x9   :  { %126 = vpow2.f32 %v23_v13  ;;  %v51_v16 = vand.u32 2147483647, %v47_v14  ;;  %v52_v17 = vand.u32 2147483647, %v48_v15  ;;  %v49_v40 = vmax.f32 %v47_v14, 0.0 }
   0xa   :  { %v50_v43 = vmax.f32 %v48_v15, 0.0 }
   0xb   :  { %v53_v18 = vsub.f32 0.0, %v51_v16  ;;  %v54_v19 = vsub.f32 0.0, %v52_v17 }
   0xd   :  { %v55_v20 = vmul.f32 1.442695, %v53_v18  ;;  %v57_v21 = vmul.f32 1.442695, %v54_v19 }
   0xf   :  { %128 = vpow2.f32 %v55_v20 }
  0x10   :  { %130 = vpow2.f32 %v57_v21 }
  0x12   :  { %v125_v22 = vpop.eup %124 }
  0x13   :  { %v127_v23 = vpop.eup %126  ;;  %v25_v24 = vadd.f32 1.0, %v125_v22 }
  0x14   :  { %v26_v25 = vadd.f32 1.0, %v127_v23 }
  0x15   :  { %132 = vlog2.f32 %v25_v24 }
  0x16   :  { %134 = vlog2.f32 %v26_v25 }
  0x19   :  { %v129_v26 = vpop.eup %128 }
  0x1a   :  { %v131_v27 = vpop.eup %130  ;;  %v59_v28 = vadd.f32 1.0, %v129_v26 }
  0x1b   :  { %v60_v29 = vadd.f32 1.0, %v131_v27 }
  0x1c   :  { %136 = vlog2.f32 %v59_v28 }
  0x1d   :  { %138 = vlog2.f32 %v60_v29 }
  0x1f   :  { %v133_v31 = vpop.eup %132 }
  0x20   :  { %v135_v33 = vpop.eup %134  ;;  %v28_v34 = vmul.f32 0.6931472, %v133_v31 }
  0x21   :  { %v30_v35 = vmul.f32 0.6931472, %v135_v33 }
  0x22   :  { %v31_v36 = vadd.f32 %v28_v34, %v15_v30 }
  0x23   :  { %v32_v37 = vadd.f32 %v30_v35, %v16_v32 }
  0x24   :  { %v37_v38 = vsub.f32 %v166_v0, %v31_v36  ;;  %v35_v63 = vsub.f32 %v31_v36, %v33_v56 }
  0x25   :  { %v38_v39 = vsub.f32 %v176_v2, %v32_v37  ;;  %v36_v6 = vsub.f32 %v32_v37, %v34_v58 }
  0x26   :  { %v137_v41 = vpop.eup %136  ;;  %v39_v42 = vmul.f32 1.442695, %v37_v38 }
  0x27   :  { %v139_v44 = vpop.eup %138  ;;  %v41_v45 = vmul.f32 1.442695, %v38_v39  ;;  %v62_v46 = vmul.f32 0.6931472, %v137_v41 }
  0x28   :  { %140 = vpow2.f32 %v39_v42  ;;  %v64_v47 = vmul.f32 0.6931472, %v139_v44 }
  0x29   :  { %142 = vpow2.f32 %v41_v45  ;;  %v65_v48 = vadd.f32 %v62_v46, %v49_v40 }
  0x2a   :  { %v66_v49 = vadd.f32 %v64_v47, %v50_v43 }
  0x2b   :  { %v67_v50 = vmul.f32 -2.0, %v65_v48 }
  0x2c   :  { %v68_v51 = vmul.f32 -2.0, %v66_v49 }
  0x2d   :  { %v69_v52 = vmul.f32 1.442695, %v67_v50 }
  0x2e   :  { %v71_v53 = vmul.f32 1.442695, %v68_v51 }
  0x2f   :  { %144 = vpow2.f32 %v69_v52 }
  0x30   :  { %146 = vpow2.f32 %v71_v53 }
  0x32   :  { %v141_v55 = vpop.eup %140 }
  0x33   :  { %v143_v57 = vpop.eup %142  ;;  %v83_v59 = vmul.f32 %v141_v55, %v171_v1  ;;  %v104_v1 = vrot.slane %v103_v10, 2 }
  0x34   :  { %v84_v60 = vmul.f32 %v143_v57, %v181_v3  ;;  %v93_v61 = vadd.f32 %v143_v57, %v141_v55 }
  0x35   :  { %v105_v19 = vadd.f32 %v104_v1, %v103_v10 }
  0x36   :  { %v85_v4 = vadd.f32 %v84_v60, %v83_v59  ;;  %v94_v5 = vrot.slane %v93_v61, 4 }
  0x37   :  { %v106_v24 = vrot.slane %v105_v19, 1 }
  0x38   :  { %v86_v7 = vrot.slane %v85_v4, 4  ;;  %v95_v8 = vadd.f32 %v94_v5, %v93_v61 }
  0x39   :  { %v145_v9 = vpop.eup %144  ;;  %v107_v29 = vadd.f32 %v106_v24, %v105_v19 }
  0x3a   :  { %v147_v11 = vpop.eup %146  ;;  %v73_v0 = vmul.f32 %v145_v9, %v35_v63  ;;  %v87_v12 = vadd.f32 %v86_v7, %v85_v4  ;;  %v96_v2 = vrot.slane %v95_v8, 2 }
  0x3b   :  { %v74_v13 = vmul.f32 %v147_v11, %v36_v6 }
  0x3c   :  { %v88_v14 = vrot.slane %v87_v12, 2  ;;  %v97_v17 = vadd.f32 %v96_v2, %v95_v8 }
  0x3d   :  { %v75_v15 = vadd.f32 %v74_v13, %v73_v0 }
  0x3e   :  { %v89_v3 = vadd.f32 %v88_v14, %v87_v12  ;;  %v98_v22 = vrot.slane %v97_v17, 1 }
  0x3f   :  { %v76_v16 = vrot.slane %v75_v15, 4 }
  0x40   :  { %v90_v21 = vrot.slane %v89_v3, 1  ;;  %v99_v27 = vadd.f32 %v98_v22, %v97_v17 }
  0x41   :  { %v77_v18 = vadd.f32 %v76_v16, %v75_v15 }
  0x42   :  { %v91_v26 = vadd.f32 %v90_v21, %v89_v3 }
  0x43   :  { %v78_v20 = vrot.slane %v77_v18, 2 }
  0x45   :  { %v79_v23 = vadd.f32 %v78_v20, %v77_v18 }
  0x47   :  { %v80_v25 = vrot.slane %v79_v23, 1 }
  0x49   :  { %v81_v28 = vadd.f32 %v80_v25, %v79_v23 }
  0x4b   :  { %v110_v30 = vsel %vm109_vm0, %v81_v28, %v91_v26 }
  0x4c   :  { %v112_v31 = vsel %vm111_vm1, %v110_v30, %v99_v27 }
  0x4d   :  { %v114_v32 = vsel %vm113_vm2, %v112_v31, %v107_v29 }
  0x4e   :  { %v116_v33 = vsel %vm115_vm3, %v114_v32, 0.0 }
  0x4f   :  { %117 = vst [vmem:[%s206_s2] sm:$0xff] %v116_v33 }

</bundles_post_ra>
